<compile_context>
chip_gen: v7x
topology: tpu7x:2x2x1
jax: 0.10.0
libtpu: 0.0.40
codegen_flags: <defaults>
</compile_context>

<pallas_src>
import jax
import jax.numpy as jnp
from jax.experimental import pallas as pl
from jax.experimental.pallas import tpu as pltpu


def _round_up(x, m):
    return (x + m - 1) // m * m


def make_adapter_kernel(c_pad):
    """Kernel closed over the (padded) channel count."""

    def kernel(x_ref, w_ref, b_ref, o_ref):
        # x_ref: (1, TILE_T, K*C_pad) bf16  im2col'd input tile (lane-dense)
        # w_ref: (K*C_pad, 2*C_pad)   bf16  fused conv weights (grid-resident)
        # b_ref: (1, 2*C_pad)         f32   bias
        # o_ref: (1, TILE_T, C_pad)   f32   GLU output tile
        acc = jnp.dot(x_ref[0], w_ref[...],
                      preferred_element_type=jnp.float32)      # MXU, f32 acc
        acc = acc + b_ref[...]                                  # broadcast bias
        a = acc[:, :c_pad]                                      # GLU halves
        g = acc[:, c_pad:]
        o_ref[0] = (a * jax.nn.sigmoid(g)).astype(o_ref.dtype)  # f32 epilogue

    return kernel


def wavlm_adapter_layer(x_ncw, weight, bias, *, stride=2, padding=1,
                        tile_t=512):
    """x_ncw: (B, C, T), weight: (2C, C, K), bias: (2C,).
    Returns (B, C, T_out), matching PyTorch Conv1d(...) + GLU(dim=1)."""
    B, C, T = x_ncw.shape
    out2, in_c, K = weight.shape
    assert in_c == C and out2 == 2 * C
    S = stride
    T_pad = T + 2 * padding
    T_out = (T_pad - K) // S + 1

    C_pad = _round_up(C, 128)                    # lane-dense channels
    TILE_T = min(tile_t, _round_up(T_out, 8))    # sublane-aligned time tile
    T_out_p = _round_up(T_out, TILE_T)

    # ---- wrapper glue: layout / padding / im2col / weight flattening ----
    x_btc = jnp.transpose(x_ncw, (0, 2, 1))                          # (B, T, C)
    x_btc = jnp.pad(x_btc, ((0, 0), (padding, padding), (0, C_pad - C)))
    # Strided tap gather done ONCE here so the kernel sees only contiguous,
    # lane-dense loads (no in-kernel sublane-strided gathers on the hot path).
    taps = [
        jax.lax.slice(x_btc, (0, k, 0),
                      (B, k + (T_out - 1) * S + 1, C_pad), (1, S, 1))
        for k in range(K)
    ]
    x_cols = jnp.concatenate(taps, axis=-1)                 # (B, T_out, K*C_pad)
    x_cols = jnp.pad(x_cols, ((0, 0), (0, T_out_p - T_out), (0, 0)))
    x_cols = x_cols.astype(jnp.bfloat16)

    # weight (2C, C, K) -> per-tap (K, C, 2C) -> pad channels keeping the GLU
    # split at the padded boundary -> one (K*C_pad, 2*C_pad) bf16 slab.
    w_taps = jnp.transpose(weight, (2, 1, 0))                        # (K, C, 2C)
    w_a = jnp.pad(w_taps[:, :, :C], ((0, 0), (0, C_pad - C), (0, C_pad - C)))
    w_g = jnp.pad(w_taps[:, :, C:], ((0, 0), (0, C_pad - C), (0, C_pad - C)))
    w_flat = jnp.concatenate([w_a, w_g], axis=-1)           # (K, C_pad, 2*C_pad)
    w_flat = w_flat.reshape(K * C_pad, 2 * C_pad).astype(jnp.bfloat16)

    b_a = jnp.pad(bias[:C], (0, C_pad - C))
    b_g = jnp.pad(bias[C:], (0, C_pad - C))
    b_pad = jnp.concatenate([b_a, b_g]).reshape(1, 2 * C_pad).astype(jnp.float32)

    kernel = make_adapter_kernel(C_pad)

    out_p = pl.pallas_call(
        kernel,
        out_shape=jax.ShapeDtypeStruct((B, T_out_p, C_pad), jnp.float32),
        grid_spec=pltpu.PrefetchScalarGridSpec(
            num_scalar_prefetch=0,
            grid=(B, T_out_p // TILE_T),
            in_specs=[
                pl.BlockSpec((1, TILE_T, K * C_pad), lambda b, t: (b, t, 0)),
                pl.BlockSpec((K * C_pad, 2 * C_pad), lambda b, t: (0, 0)),
                pl.BlockSpec((1, 2 * C_pad), lambda b, t: (0, 0)),
            ],
            out_specs=pl.BlockSpec((1, TILE_T, C_pad), lambda b, t: (b, t, 0)),
        ),
        compiler_params=pltpu.CompilerParams(
            dimension_semantics=("parallel", "parallel"),
            vmem_limit_bytes=48 * 1024 * 1024,
        ),
    )(x_cols, w_flat, b_pad)

    out_btc = out_p[:, :T_out, :C]                                   # unpad
    return jnp.transpose(out_btc, (0, 2, 1)).astype(x_ncw.dtype)     # (B, C, T_out)


def reference(x_ncw, weight, bias, *, stride=2, padding=1):
    """Pure-JAX f32 reference: conv1d (NCW) + GLU along channels."""
    y = jax.lax.conv_general_dilated(
        x_ncw, weight,
        window_strides=(stride,),
        padding=[(padding, padding)],
        dimension_numbers=("NCH", "OIH", "NCH"),
    ) + bias[None, :, None]
    C = x_ncw.shape[1]
    a, g = y[:, :C, :], y[:, C:, :]
    return a * jax.nn.sigmoid(g)


if __name__ == "__main__":
    # Small shapes consistent with the module: B=2, hidden C=32, seq T=8,
    # adapter_kernel_size=3, adapter_stride=2 (WavLM defaults).
    B, C, T = 2, 32, 8
    K, S, P = 3, 2, 1

    key = jax.random.PRNGKey(0)
    kx, kw, kb = jax.random.split(key, 3)
    x = jax.random.normal(kx, (B, C, T), dtype=jnp.float32)
    weight = jax.random.normal(kw, (2 * C, C, K), dtype=jnp.float32) * 0.1
    bias = jax.random.normal(kb, (2 * C,), dtype=jnp.float32) * 0.1

    out = wavlm_adapter_layer(x, weight, bias, stride=S, padding=P)
    out = jax.block_until_ready(out)

    ref = jax.block_until_ready(reference(x, weight, bias, stride=S, padding=P))
    assert out.shape == ref.shape, (out.shape, ref.shape)
    # bf16 MXU operands (f32 accumulation) -> loosened tolerance vs f32 ref.
    assert jnp.allclose(out, ref, atol=3e-2, rtol=3e-2), "mismatch vs reference"

    print("KERNEL_OK")
</pallas_src>

<mosaic_0001>
module attributes {stable_mosaic.version = 11 : i64} {
  func.func @kernel(%arg0: i32, %arg1: i32, %arg2: memref<1x8x384xbf16, #tpu.memory_space<vmem>>, %arg3: memref<384x256xbf16, #tpu.memory_space<vmem>>, %arg4: memref<1x256xf32, #tpu.memory_space<vmem>>, %arg5: memref<1x8x128xf32, #tpu.memory_space<vmem>>) attributes {dimension_semantics = [#tpu.dimension_semantics<parallel>, #tpu.dimension_semantics<parallel>], iteration_bounds = array<i64: 2, 1>, scalar_prefetch = 0 : i64, scratch_operands = 0 : i64, tpu.core_type = #tpu.core_type<tc>, window_params = [{transform_indices = @transform_0, window_bounds = array<i64: 1, 8, 384>}, {pipeline_mode = #tpu.pipeline_mode<synchronous>, transform_indices = @transform_1, window_bounds = array<i64: 384, 256>}, {pipeline_mode = #tpu.pipeline_mode<synchronous>, transform_indices = @transform_2, window_bounds = array<i64: 1, 256>}, {transform_indices = @transform_3, window_bounds = array<i64: 1, 8, 128>}]} {
    %c0 = arith.constant 0 : index
    %c0_0 = arith.constant 0 : index
    %c0_1 = arith.constant 0 : index
    %0 = vector.load %arg2[%c0, %c0_0, %c0_1] : memref<1x8x384xbf16, #tpu.memory_space<vmem>>, vector<1x8x384xbf16>
    %1 = vector.shape_cast %0 : vector<1x8x384xbf16> to vector<8x384xbf16>
    %c0_2 = arith.constant 0 : index
    %c0_3 = arith.constant 0 : index
    %2 = vector.load %arg3[%c0_2, %c0_3] : memref<384x256xbf16, #tpu.memory_space<vmem>>, vector<384x256xbf16>
    %cst = arith.constant dense<0.000000e+00> : vector<8x256xf32>
    %3 = tpu.matmul %1, %2, %cst {dimension_numbers = #tpu.dot_dimension_numbers<[1], [0], [0], [1], [0, 0, 1, 1], [], []>} : vector<8x384xbf16>, vector<384x256xbf16>, vector<8x256xf32> -> vector<8x256xf32>
    %c0_4 = arith.constant 0 : index
    %c0_5 = arith.constant 0 : index
    %4 = vector.load %arg4[%c0_4, %c0_5] : memref<1x256xf32, #tpu.memory_space<vmem>>, vector<1x256xf32>
    %5 = vector.broadcast %4 : vector<1x256xf32> to vector<8x256xf32>
    %6 = arith.addf %3, %5 : vector<8x256xf32>
    %7 = vector.extract_strided_slice %6 {offsets = [0, 0], sizes = [8, 128], strides = [1, 1]} : vector<8x256xf32> to vector<8x128xf32>
    %8 = vector.extract_strided_slice %6 {offsets = [0, 128], sizes = [8, 128], strides = [1, 1]} : vector<8x256xf32> to vector<8x128xf32>
    %9 = arith.negf %8 : vector<8x128xf32>
    %10 = math.exp %9 : vector<8x128xf32>
    %cst_6 = arith.constant 1.000000e+00 : f32
    %11 = vector.broadcast %cst_6 : f32 to vector<8x128xf32>
    %12 = arith.addf %11, %10 : vector<8x128xf32>
    %13 = arith.divf %11, %12 : vector<8x128xf32>
    %14 = arith.mulf %7, %13 : vector<8x128xf32>
    %c0_7 = arith.constant 0 : index
    %c0_8 = arith.constant 0 : index
    %c0_9 = arith.constant 0 : index
    %15 = vector.load %arg5[%c0_7, %c0_8, %c0_9] : memref<1x8x128xf32, #tpu.memory_space<vmem>>, vector<1x8x128xf32>
    %16 = vector.shape_cast %15 : vector<1x8x128xf32> to vector<8x128xf32>
    %17 = vector.shape_cast %14 : vector<8x128xf32> to vector<1x8x128xf32>
    tpu.vector_store %arg5[%c0_7, %c0_8, %c0_9], %17 {strides = array<i32>} : memref<1x8x128xf32, #tpu.memory_space<vmem>>, vector<1x8x128xf32>,
    return
  }
  func.func @transform_0(%arg0: i32, %arg1: i32) -> (i32, i32, i32) {
    %c0_i32 = arith.constant 0 : i32
    %c0_i32_0 = arith.constant 0 : i32
    return %arg0, %arg1, %c0_i32 : i32, i32, i32
  }
  func.func @transform_1(%arg0: i32, %arg1: i32) -> (i32, i32) {
    %c0_i32 = arith.constant 0 : i32
    %c0_i32_0 = arith.constant 0 : i32
    %c0_i32_1 = arith.constant 0 : i32
    return %c0_i32, %c0_i32_0 : i32, i32
  }
  func.func @transform_2(%arg0: i32, %arg1: i32) -> (i32, i32) {
    %c0_i32 = arith.constant 0 : i32
    %c0_i32_0 = arith.constant 0 : i32
    %c0_i32_1 = arith.constant 0 : i32
    return %c0_i32, %c0_i32_0 : i32, i32
  }
  func.func @transform_3(%arg0: i32, %arg1: i32) -> (i32, i32, i32) {
    %c0_i32 = arith.constant 0 : i32
    %c0_i32_0 = arith.constant 0 : i32
    return %arg0, %arg1, %c0_i32 : i32, i32, i32
  }
}

</mosaic_0001>

<bundles_post_ra>
// kernel: tpu_custom_call.1
= control target key start
LH: loop header
LB: loop body
LE: loop exit
PB: predicated region body
PF: predicated region fallthrough
CT: control target
= control target key end

     0   :  { %8 = vsyncpa [#allocation3], 0  ;;  %s1346_s0 = inlined_call_operand.hbm [shape: bf16[2,8,384], index: 0, kind: input, shape index: {}]   ;;  %s1347_s1 = inlined_call_operand.hbm [shape: bf16[384,256], index: 1, kind: input, shape index: {}]   ;;  %s1348_s2 = inlined_call_operand.vmem [shape: f32[1,256], index: 2, kind: input, shape index: {}]   ;;  %s1349_s3 = inlined_call_operand.hbm [shape: f32[2,8,128], index: 3, kind: output, shape index: {}]  }
   0x1   :  { %10 = vsyncpa [#allocation3 + $0x1], 0 }
   0x2   :  { %11 = vsyncpa [#allocation6], 0 }
   0x3   :  { %12 = vsyncpa [#allocation4], 0 }
   0x4   :  { %14 = vsyncpa [#allocation4 + $0x1], 0  ;;  %s1130_s12 = smov 0   ;;  %s1132_s13 = smov 0  }
   0x5   :  { %s1134_s14 = smov 0   ;;  %s1136_s15 = smov 0  }
   0x6   :  { %s1138_s16 = smov 0   ;;  %s1140_s17 = smov 0  }
   0x7 LB: > { %s731_s18 = sadd.s32 4294967295, %s1102_s17   ;;  %s732_s19 = sadd.s32 4294967294, %s1102_s17   ;;  %s1102_s17 = sphi %s1140_s17, %s20_s17   ;;  %s1098_s16 = sphi %s1138_s16, %s1372_s16   ;;  %s1094_s15 = sphi %s1136_s15, %s1371_s15   ;;  %s1090_s14 = sphi %s1134_s14, %s1370_s14   ;;  %s1086_s13 = sphi %s1132_s13, %s1369_s13   ;;  %s1082_s12 = sphi %s1130_s12, %s1368_s12  }
   0x8   : > { %p54_p0 = scmp.ne.s32.totalorder %s1086_s13, %s1082_s12  ;;  %p1164_p1 = scmp.eq.s32.totalorder %s731_s18, 0 }
   0x9   : > { %p1168_p2 = scmp.eq.s32.totalorder %s731_s18, 1  ;;  %p128_p3 = scmp.eq.s32.totalorder %s732_s19, 1 }
   0xa   : > { %s1354_s20 = scalar_select %p1164_p1, 1, 0 }
   0xb   : > { %s1355_s21 = scalar_select %p1168_p2, 1, 0 }
   0xc   : > { %p1174_p4 = por %p1164_p1, %p54_p0  ;;  %p733_p5 = scmp.ge.s32.totalorder %s1102_s17, 1 }
   0xd   : > { %p1179_p6 = por %p128_p3, %p54_p0  ;;  %p135_p7 = scmp.lt.s32.totalorder %s1102_s17, 3 }
   0xe   : > { %s1356_s22 = scalar_select %p1174_p4, 1, 0 }
   0xf   : > { %s1357_s23 = scalar_select %p1179_p6, 1, 0 }
  0x10   : > { %p1184_p8 = pnand %p733_p5, %p135_p7  ;;  %s1104_s25 = smov [#allocation5]  }
  0x11   : > { %s147_s26 = sshll.u32 %s1104_s25, 4  ;;  %s32_s28 = sadd.s32 1, %s1098_s16  ;;  %s148_s26 = int_to_ptr.vmem [resolvable:$true] %s147_s26 }
  0x12   : > { %s1358_s24 = scalar_select %p1184_p8, 1, 0 }
  0x13   : > { %p811_p9 = pneg %p1184_p8  ;;  %s958_s4 = scalar_lea.hbm %s1347_s1, 6144 }
  0x14   : > { %p959_p12 = scmp.ne.s32.totalorder %s1347_s1, %s958_s4  ;;  %p965_p5 = scmp.lt.u32.totalorder %s958_s4, %s1347_s1 }
  0x15   : > { %p1193_p11 = pnand %p811_p9, %p1164_p1 }
  0x17   : > { %p960_p13 = pneg %p1193_p11 }
  0x19   : > { %p961_p0 = pnand %p960_p13, %p959_p12 }
  0x1b   : > { %p962_p3 = pneg %p961_p0 }
  0x1d   : > { %p967_p7 = pnand %p965_p5, %p962_p3 }
  0x1f   : > { %970 = shalt.err (!%p967_p7)
}
  0x20   : > { %s971_s9 = scalar_lea.vmem %s148_s26, 6144  ;;  %p979_p1 = scmp.lt.s32.totalorder %s148_s26, %s148_s26 }
  0x21   : > { %p972_p9 = scmp.ne.s32.totalorder %s148_s26, %s971_s9  ;;  %p980_p4 = scmp.lt.s32.totalorder %s971_s9, %s971_s9 }
  0x23   : > { %p974_p10 = pnand %p972_p9, %p960_p13  ;;  %p981_p8 = por %p980_p4, %p979_p1 }
  0x25   : > { %p975_p6 = pneg %p974_p10 }
  0x27   : > { %p982_p2 = pnand %p981_p8, %p975_p6 }
  0x29   : > { %985 = shalt.err (!%p982_p2)
}
  0x2a   : > { %s1105_s10 = smov 128   ;;  %s1106_s11 = smov 8  }
  0x2b   : > { %814 = dma.hbm_to_vmem [thread:$0]  (!%p1193_p11), %s1347_s1, 6144, %s148_s26, [#allocation6], %s1105_s10, %s1105_s10, %s1106_s11  }
  0x2c   : > { %p34_p1 = scmp.ge.s32.totalorder %s32_s28, 2  ;;  %s41_s25 = sadd.s32 1, %s1090_s14 }
  0x2d   : > { %p48_p2 = scmp.ne.s32.totalorder %s1090_s14, %s1086_s13  ;;  %p49_p4 = scmp.eq.s32.totalorder %s1102_s17, 0 }
  0x2e   : > { %s1374_s28 = smov (%p34_p1, %s32_s28), 0  ;;  %p1360_p8 = scmp.ne.s32.totalorder %s1355_s21, 0 }
  0x2f   : > { %p50_p6 = por %p49_p4, %p48_p2  ;;  %s36_s30 = ssub.s32 %s1098_s16, %s1374_s28 }
  0x30   : > { %p1222_p10 = por %p1360_p8, %p48_p2  ;;  %p824_p12 = scmp.lt.s32.totalorder %s1102_s17, 2 }
  0x31   : > { %p39_p13 = scmp.eq.s32.totalorder %s36_s30, 0  ;;  %s164_s27 = sand.u32 1, %s1090_s14  }
  0x32   : > { %s800_s4 = smul.u32 12, %s164_s27  ;;  %p1234_p11 = pnand %p824_p12, %p50_p6 }
  0x33   : > { %s1231_s5 = scalar_select %p39_p13, %s1090_s14, %s41_s25  }
  0x34   : > { %s801_s26 = smul.u32 192, %s1098_s16  ;;  %s168_s6 = scalar_lea.vmem [#allocation2], %s800_s4 }
  0x35   : > { %s178_s7 = sshll.u32 %s168_s6, 4  ;;  %s165_s11 = scalar_lea.sflag [#allocation3], %s164_s27  ;;  %s1243_s7 = int_to_ptr.vmem [resolvable:$true] %s178_s7 }
  0x36   : > { %s1241_s10 = scalar_lea.hbm %s1346_s0, %s801_s26  ;;  %p988_p3 = pneg %p1234_p11 }
  0x37   : > { %s986_s18 = scalar_lea.hbm %s1241_s10, 192  ;;  %s991_s30 = scalar_lea.hbm %s1346_s0, 384 }
  0x38   : > { %p987_p0 = scmp.ne.s32.totalorder %s1241_s10, %s986_s18  ;;  %p992_p9 = scmp.lt.u32.totalorder %s1241_s10, %s1346_s0 }
  0x39   : > { %p993_p1 = scmp.lt.u32.totalorder %s991_s30, %s986_s18  ;;  %p995_p4 = scmp.lt.u32.totalorder %s986_s18, %s1241_s10 }
  0x3a   : > { %p989_p5 = pnand %p988_p3, %p987_p0 }
  0x3b   : > { %p994_p2 = por %p993_p1, %p992_p9 }
  0x3c   : > { %p990_p7 = pneg %p989_p5 }
  0x3d   : > { %p996_p6 = por %p995_p4, %p994_p2 }
  0x3f   : > { %p997_p8 = pnand %p996_p6, %p990_p7 }
  0x41   : > { %1000 = shalt.err (!%p997_p8)
}
  0x42   : > { %s1001_s27 = scalar_lea.vmem %s1243_s7, 192  ;;  %s1107_s6 = smov [#allocation2]  }
  0x43   : > { %p1002_p12 = scmp.ne.s32.totalorder %s1243_s7, %s1001_s27  ;;  %s1006_s9 = sshll.u32 %s1107_s6, 4  ;;  %s1007_s9 = int_to_ptr.vmem [resolvable:$false] %s1006_s9 }
  0x44   : > { %s1008_s21 = scalar_lea.vmem %s1007_s9, 384  ;;  %p1009_p5 = scmp.lt.s32.totalorder %s1243_s7, %s1007_s9 }
  0x45   : > { %p1004_p13 = pnand %p1002_p12, %p988_p3  ;;  %p1010_p9 = scmp.lt.s32.totalorder %s1008_s21, %s1001_s27 }
  0x47   : > { %p1005_p0 = pneg %p1004_p13  ;;  %p1011_p1 = por %p1010_p9, %p1009_p5 }
  0x49   : > { %p1012_p2 = pnand %p1011_p1, %p1005_p0 }
  0x4b   : > { %1015 = shalt.err (!%p1012_p2)
}
  0x4c   : > { %818 = dma.hbm_to_vmem [thread:$0]  (!%p1234_p11), %s1241_s10, 192, %s1243_s7, %s165_s11  }
  0x4d   : > { %p1363_p7 = scmp.ne.s32.totalorder %s1358_s24, 0 }
  0x4e   : > { %s1273_s18 = sand.u32 (!%p1363_p7), 1, %s1086_s13   ;;  %p1364_p3 = scmp.ne.s32.totalorder (!%p1363_p7), %s1356_s22, 0 }
  0x4f   : > { %187 = sbr.rel (%p1363_p7) target bundleno = 414 (0x19e), region = 32  ;;  %s190_s25 = scalar_lea.sflag (!%p1363_p7), [#allocation3], %s1273_s18 }
  0x50   : > { %s802_s19 = smul.u32 (!%p1363_p7), 12, %s1273_s18 }
  0x52   : > { %s1277_s30 = scalar_lea.vmem (!%p1363_p7), [#allocation2], %s802_s19 }
  0x56   : > { %1069 = dma.done.wait (%p1364_p3), %s190_s25, 192  }
  0x57   : > { %1071 = vsyncadd (%p1364_p3), %s190_s25, 4294967104  ;;  %p1365_p11 = scmp.ne.s32.totalorder %s1354_s20, 0 }
  0x59   : > { %1073 = dma.done.wait (%p1365_p11), [#allocation6], 6144  }
  0x5a   : > { %1075 = vsyncadd (%p1365_p11), [#allocation6], 4294961152  ;;  %v1108_v0 = vmov 0   ;;  %v879_v1 = vld [vmem:[#allocation5 + $0x4] ss:$8 sps:$4 sm:$0xff]   ;;  %v273_v57 = vlaneseq  ;;  %s739_s24 = sshll.u32 %s1273_s18, 3 }
  0x5b   : > { %607 = vmatprep.mubr.bf16.mxu0 %v1108_v0  ;;  %v881_v2 = vld [vmem:[#allocation5] ss:$8 sps:$4 sm:$0xff]   ;;  %534 = vmatprep.subr.bf16.mxu1 %v879_v1  ;;  %v882_v3 = vld [vmem:[#allocation5 + $0x14] ss:$8 sps:$4 sm:$0xff]   ;;  %v884_v4 = vld [vmem:[#allocation5 + $0x10] ss:$8 sps:$4 sm:$0xff]  }
  0x5c   : > { %535 = vmatpush1.bf16.msra.mxu1 %v881_v2  ;;  %v885_v5 = vld [vmem:[#allocation5 + $0x24] ss:$8 sps:$4 sm:$0xff]   ;;  %v887_v6 = vld [vmem:[#allocation5 + $0x20] ss:$8 sps:$4 sm:$0xff]   ;;  %v888_v7 = vld [vmem:[#allocation5 + $0x34] ss:$8 sps:$4 sm:$0xff]  }
  0x5d   : > { %536 = vmatprep.subr.bf16.mxu1 %v882_v3  ;;  %v890_v8 = vld [vmem:[#allocation5 + $0x30] ss:$8 sps:$4 sm:$0xff]   ;;  %v903_v9 = vld [vmem:[#allocation5 + $0x104] ss:$8 sps:$4 sm:$0xff]   ;;  %v907_v11 = vld [vmem:[#allocation5 + $0x100] ss:$8 sps:$4 sm:$0xff]  }
  0x5e   : > { %v891_v10 = vld [vmem:[#allocation5 + $0x44] ss:$8 sps:$4 sm:$0xff]   ;;  %575 = vmatprep.subr.bf16.mxu0 %v903_v9  ;;  %v909_v12 = vld [vmem:[#allocation5 + $0x114] ss:$8 sps:$4 sm:$0xff]   ;;  %v893_v13 = vld [vmem:[#allocation5 + $0x40] ss:$8 sps:$4 sm:$0xff]  }
  0x5f   : > { %576 = vmatpush1.bf16.msra.mxu0 %v907_v11  ;;  %v894_v14 = vld [vmem:[#allocation5 + $0x54] ss:$8 sps:$4 sm:$0xff]   ;;  %v913_v15 = vld [vmem:[#allocation5 + $0x110] ss:$8 sps:$4 sm:$0xff]   ;;  %v915_v16 = vld [vmem:[#allocation5 + $0x124] ss:$8 sps:$4 sm:$0xff]  }
  0x60   : > { %537 = vmatpush1.bf16.msra.mxu1 %v884_v4  ;;  %577 = vmatprep.subr.bf16.mxu0 %v909_v12  ;;  %v896_v17 = vld [vmem:[#allocation5 + $0x50] ss:$8 sps:$4 sm:$0xff]   ;;  %v919_v18 = vld [vmem:[#allocation5 + $0x120] ss:$8 sps:$4 sm:$0xff]   ;;  %v921_v19 = vld [vmem:[#allocation5 + $0x134] ss:$8 sps:$4 sm:$0xff]  }
  0x61   : > { %538 = vmatprep.subr.bf16.mxu1 %v885_v5  ;;  %v897_v20 = vld [vmem:[#allocation5 + $0x64] ss:$8 sps:$4 sm:$0xff]   ;;  %v925_v21 = vld [vmem:[#allocation5 + $0x130] ss:$8 sps:$4 sm:$0xff]   ;;  %v899_v22 = vld [vmem:[#allocation5 + $0x60] ss:$8 sps:$4 sm:$0xff]  }
  0x62   : > { %v927_v23 = vld [vmem:[#allocation5 + $0x144] ss:$8 sps:$4 sm:$0xff]   ;;  %v900_v24 = vld [vmem:[#allocation5 + $0x74] ss:$8 sps:$4 sm:$0xff]   ;;  %v902_v25 = vld [vmem:[#allocation5 + $0x70] ss:$8 sps:$4 sm:$0xff]  }
  0x63   : > { %578 = vmatpush1.bf16.msra.mxu0 %v913_v15  ;;  %v931_v26 = vld [vmem:[#allocation5 + $0x140] ss:$8 sps:$4 sm:$0xff]   ;;  %v933_v27 = vld [vmem:[#allocation5 + $0x154] ss:$8 sps:$4 sm:$0xff]   ;;  %v905_v28 = vld [vmem:[#allocation5 + $0x84] ss:$8 sps:$4 sm:$0xff]  }
  0x64   : > { %539 = vmatpush1.bf16.msra.mxu1 %v887_v6  ;;  %579 = vmatprep.subr.bf16.mxu0 %v915_v16  ;;  %v937_v29 = vld [vmem:[#allocation5 + $0x150] ss:$8 sps:$4 sm:$0xff]   ;;  %v908_v30 = vld [vmem:[#allocation5 + $0x80] ss:$8 sps:$4 sm:$0xff]   ;;  %v939_v31 = vld [vmem:[#allocation5 + $0x164] ss:$8 sps:$4 sm:$0xff]  }
  0x65   : > { %540 = vmatprep.subr.bf16.mxu1 %v888_v7  ;;  %v911_v32 = vld [vmem:[#allocation5 + $0x94] ss:$8 sps:$4 sm:$0xff]   ;;  %v943_v35 = vld [vmem:[#allocation5 + $0x160] ss:$8 sps:$4 sm:$0xff]   ;;  %v914_v36 = vld [vmem:[#allocation5 + $0x90] ss:$8 sps:$4 sm:$0xff]  }
  0x66   : > { %v221_v33 = vld [vmem:[%s1277_s30] sm:$0xff]  ;;  %v953_v42 = vld [vmem:[%s1277_s30 + $0x8] ss:$0 sps:$4 sm:$0xff]   ;;  %v274_v58 = vshrl.u32 %v273_v57, 7  ;;  %s793_s7 = sshll.u32 %s1094_s15, 7  ;;  %s219_s8 = scalar_lea.vmem [#allocation7], %s739_s24 }
  0x67   : > { %580 = vmatpush1.bf16.msra.mxu0 %v919_v18  ;;  %v741_v34 = vcombine.high %v221_v33, %v221_v33  ;;  %v945_v37 = vld [vmem:[#allocation5 + $0x174] ss:$8 sps:$4 sm:$0xff]   ;;  %v917_v38 = vld [vmem:[#allocation5 + $0xa4] ss:$8 sps:$4 sm:$0xff]   ;;  %v949_v39 = vld [vmem:[#allocation5 + $0x170] ss:$8 sps:$4 sm:$0xff]   ;;  %v740_v52 = vcombine.low %v221_v33, %v221_v33  ;;  %s1297_s26 = scalar_lea.hbm %s1349_s3, %s793_s7 }
  0x68   : > { %541 = vmatpush1.bf16.msra.mxu1 %v890_v8  ;;  %581 = vmatprep.subr.bf16.mxu0 %v921_v19  ;;  %v920_v40 = vld [vmem:[#allocation5 + $0xa0] ss:$8 sps:$4 sm:$0xff]   ;;  %v923_v41 = vld [vmem:[#allocation5 + $0xb4] ss:$8 sps:$4 sm:$0xff]   ;;  %v926_v43 = vld [vmem:[#allocation5 + $0xb0] ss:$8 sps:$4 sm:$0xff]  }
  0x69   : > { %542 = vmatprep.subr.bf16.mxu1 %v891_v10  ;;  %566 = vmatprep.mubr.bf16.mxu1 %v741_v34  ;;  %v929_v44 = vld [vmem:[#allocation5 + $0xc4] ss:$8 sps:$4 sm:$0xff]   ;;  %v932_v45 = vld [vmem:[#allocation5 + $0xc0] ss:$8 sps:$4 sm:$0xff]   ;;  %v935_v46 = vld [vmem:[#allocation5 + $0xd4] ss:$8 sps:$4 sm:$0xff]  }
  0x6a   : > { %v938_v47 = vld [vmem:[#allocation5 + $0xd0] ss:$8 sps:$4 sm:$0xff]   ;;  %v941_v48 = vld [vmem:[#allocation5 + $0xe4] ss:$8 sps:$4 sm:$0xff]   ;;  %v944_v49 = vld [vmem:[#allocation5 + $0xe0] ss:$8 sps:$4 sm:$0xff]  }
  0x6b   : > { %582 = vmatpush1.bf16.msra.mxu0 %v925_v21  ;;  %v947_v50 = vld [vmem:[#allocation5 + $0xf4] ss:$8 sps:$4 sm:$0xff]   ;;  %v950_v51 = vld [vmem:[#allocation5 + $0xf0] ss:$8 sps:$4 sm:$0xff]   ;;  %v275_v59 = vsub.s32 0, %v274_v58  ;;  %v279_v61 = vsub.s32 1, %v274_v58 }
  0x6c   : > { %543 = vmatpush1.bf16.msra.mxu1 %v893_v13  ;;  %583 = vmatprep.subr.bf16.mxu0 %v927_v23  ;;  %v271_v60 = vld [vmem:[%s1348_s2] sm:$0x3]  ;;  %s639_s10 = sshll.u32 %s219_s8, 4  ;;  %s625_s27 = scalar_lea.sflag [#allocation4], %s1273_s18  ;;  %s1299_s10 = int_to_ptr.vmem [resolvable:$true] %s639_s10 }
  0x6d   : > { %544 = vmatprep.subr.bf16.mxu1 %v894_v14  ;;  %v276_v62 = vrot.slane %v271_v60, %v275_v59  ;;  %v280_v63 = vrot.slane %v271_v60, %v279_v61  ;;  %s1016_s6 = scalar_lea.vmem %s1299_s10, 128  ;;  %s1109_s15 = smov [#allocation7]  }
  0x6e   : > { %p1017_p4 = scmp.ne.s32.totalorder %s1299_s10, %s1016_s6  ;;  %s1020_s9 = sshll.u32 %s1109_s15, 4  ;;  %s1021_s9 = int_to_ptr.vmem [resolvable:$false] %s1020_s9 }
  0x6f   : > { %584 = vmatpush1.bf16.msra.mxu0 %v931_v26  ;;  %s1022_s21 = scalar_lea.vmem %s1021_s9, 256  ;;  %p1023_p12 = scmp.lt.s32.totalorder %s1299_s10, %s1021_s9 }
  0x70   : > { %545 = vmatpush1.bf16.msra.mxu1 %v896_v17  ;;  %585 = vmatprep.subr.bf16.mxu0 %v933_v27  ;;  %p1018_p6 = pnand %p1017_p4, %p1222_p10  ;;  %p1024_p13 = scmp.lt.s32.totalorder %s1022_s21, %s1016_s6 }
  0x71   : > { %546 = vmatprep.subr.bf16.mxu1 %v897_v20 }
  0x72   : > { %p1019_p8 = pneg %p1018_p6  ;;  %p1025_p0 = por %p1024_p13, %p1023_p12 }
  0x73   : > { %586 = vmatpush1.bf16.msra.mxu0 %v937_v29 }
  0x74   : > { %547 = vmatpush1.bf16.msra.mxu1 %v899_v22  ;;  %587 = vmatprep.subr.bf16.mxu0 %v939_v31  ;;  %p1026_p5 = pnand %p1025_p0, %p1019_p8 }
  0x75   : > { %548 = vmatprep.subr.bf16.mxu1 %v900_v24 }
  0x77   : > { %588 = vmatpush1.bf16.msra.mxu0 %v943_v35 }
  0x78   : > { %549 = vmatpush1.bf16.msra.mxu1 %v902_v25  ;;  %589 = vmatprep.subr.bf16.mxu0 %v945_v37 }
  0x79   : > { %550 = vmatprep.subr.bf16.mxu1 %v905_v28 }
  0x7b   : > { %590 = vmatpush1.bf16.msra.mxu0 %v949_v39 }
  0x7c   : > { %551 = vmatpush1.bf16.msra.mxu1 %v908_v30 }
  0x7d   : > { %552 = vmatprep.subr.bf16.mxu1 %v911_v32 }
  0x7e   : > { %608 = vmatmul.mubr.bf16.vlgmr.msra.gmra.mrb[0].mxu0 %v953_v42 }
  0x80   : > { %553 = vmatpush1.bf16.msra.mxu1 %v914_v36 }
  0x81   : > { %554 = vmatprep.subr.bf16.mxu1 %v917_v38 }
  0x84   : > { %555 = vmatpush1.bf16.msra.mxu1 %v920_v40 }
  0x85   : > { %556 = vmatprep.subr.bf16.mxu1 %v923_v41 }
  0x88   : > { %557 = vmatpush1.bf16.msra.mxu1 %v926_v43 }
  0x89   : > { %558 = vmatprep.subr.bf16.mxu1 %v929_v44 }
  0x8c   : > { %559 = vmatpush1.bf16.msra.mxu1 %v932_v45 }
  0x8d   : > { %560 = vmatprep.subr.bf16.mxu1 %v935_v46 }
  0x90   : > { %561 = vmatpush1.bf16.msra.mxu1 %v938_v47 }
  0x91   : > { %562 = vmatprep.subr.bf16.mxu1 %v941_v48 }
  0x94   : > { %563 = vmatpush1.bf16.msra.mxu1 %v944_v49 }
  0x95   : > { %564 = vmatprep.subr.bf16.mxu1 %v947_v50 }
  0x98   : > { %565 = vmatpush1.bf16.msra.mxu1 %v950_v51 }
  0x9b   : > { %567 = vmatmul.mubr.bf16.vlgmr.msra.gmra.mrb[0].mxu1 %v740_v52 }
 0x151   : > { %v609_v53 = vpop.f32.mrb[0].mxu0 }
 0x152   : > { %v611_v54 = vpop.f32.mrb[1].mxu0 }
 0x153   : > { %v613_v55 = vpop.f32.mrb[2].mxu0 }
 0x154   : > { %v614_v56 = vpop.f32.mrb[3].mxu0 }
 0x16e   : > { %v568_v0 = vpop.f32.mrb[0].mxu1 }
 0x16f   : > { %v569_v1 = vadd.f32 %v568_v0, %v276_v62  ;;  %v570_v2 = vpop.f32.mrb[1].mxu1 }
 0x170   : > { %v571_v3 = vadd.f32 %v570_v2, %v280_v63  ;;  %v572_v4 = vpop.f32.mrb[2].mxu1 }
 0x171   : > { %v610_v5 = vadd.f32 %v609_v53, %v569_v1  ;;  %v573_v6 = vpop.f32.mrb[3].mxu1 }
 0x172   : > { %v612_v7 = vadd.f32 %v611_v54, %v571_v3 }
 0x174   : > { %v791_v8 = vmul.f32 -1.442695, %v612_v7 }
 0x176   : > { %954 = vpow2.f32 %v791_v8 }
 0x180   : > { %v955_v9 = vpop.eup %954 }
 0x181   : > { %v619_v10 = vadd.f32 1.0, %v955_v9 }
 0x183   : > { %956 = vrcp.f32 %v619_v10 }
 0x18d   : > { %v957_v11 = vpop.eup %956 }
 0x18e   : > { %v622_v12 = vmul.f32 %v957_v11, %v610_v5 }
 0x190   : > { %623 = vst [vmem:[%s219_s8] sm:$0xff] %v622_v12 }
 0x191   : > { %1029 = shalt.err (!%p1026_p5)
}
 0x192   : > { %s1030_s18 = scalar_lea.hbm %s1297_s26, 128  ;;  %s1034_s30 = scalar_lea.hbm %s1349_s3, 256 }
 0x193   : > { %p1031_p9 = scmp.ne.s32.totalorder %s1297_s26, %s1030_s18  ;;  %p1035_p7 = scmp.lt.u32.totalorder %s1297_s26, %s1349_s3 }
 0x194   : > { %p1036_p3 = scmp.lt.u32.totalorder %s1034_s30, %s1030_s18  ;;  %p1038_p4 = scmp.lt.u32.totalorder %s1030_s18, %s1297_s26 }
 0x195   : > { %p1032_p1 = pnand %p1031_p9, %p1222_p10 }
 0x196   : > { %p1037_p11 = por %p1036_p3, %p1035_p7 }
 0x197   : > { %p1033_p2 = pneg %p1032_p1 }
 0x198   : > { %p1039_p6 = por %p1038_p4, %p1037_p11 }
 0x19a   : > { %p1040_p8 = pnand %p1039_p6, %p1033_p2 }
 0x19c   : > { %1043 = shalt.err (!%p1040_p8)
}
 0x19d   : > { %809 = dma.vmem_to_hbm [thread:$0]  (%p1222_p10), %s1299_s10, 128, %s1297_s26, %s625_s27  }
 0x19e PF: > { %s651_s24 = sand.u32 1, %s1082_s12   ;;  %p1366_p12 = scmp.ne.s32.totalorder %s1357_s23, 0 }
 0x19f   : > { %p1367_p13 = scmp.ge.s32.totalorder %s1102_s17, 2  ;;  %s652_s7 = scalar_lea.sflag [#allocation4], %s651_s24 }
 0x1a1   : > { %p820_p0 = pnand %p1367_p13, %p1366_p12 }
 0x1a3   : > { %1077 = dma.done.wait (!%p820_p0), %s652_s7, 128  }
 0x1a4   : > { %1079 = vsyncadd (!%p820_p0), %s652_s7, 4294967168  ;;  %s20_s17 = sadd.s32 1, %s1102_s17   ;;  %s1368_s12 = smov %s1086_s13 }
 0x1a5   : > { %p17_p5 = scmp.ge.s32.totalorder %s20_s17, 4   ;;  %s1369_s13 = smov %s1090_s14 }
 0x1a6   : > { %s1370_s14 = smov %s1231_s5  ;;  %s1371_s15 = smov %s1098_s16 }
 0x1a7   : > { %s1372_s16 = smov %s1374_s28  ;;  %19 = sbr.rel (!%p17_p5) target bundleno = 7 (0x7), region = 81 }
 0x1ae   :  { %657 = vsyncpa [#allocation3], 1 }
 0x1af   :  { %659 = vsyncpa [#allocation3 + $0x1], 1 }
 0x1b0   :  { %660 = vsyncpa [#allocation6], 1 }
 0x1b1   :  { %661 = vsyncpa [#allocation4], 1 }
 0x1b2   :  { %663 = vsyncpa [#allocation4 + $0x1], 1 }

</bundles_post_ra>
